<compile_context>
chip_gen: v5e
topology: v5e:2x2
jax: 0.10.0
libtpu: 0.0.40
codegen_flags: <defaults>
</compile_context>

<pallas_src>
import functools

import jax
import jax.numpy as jnp
from jax.experimental import pallas as pl
from jax.experimental.pallas import tpu as pltpu

MXU_DTYPE = jnp.bfloat16
LN_EPS = 1e-5


# ----------------------------------------------------------------------------
# Hardware-generation config (VMEM budget, MXU lane alignment, megacore).
# ----------------------------------------------------------------------------
def _hw_config():
    kind = ""
    try:
        kind = jax.devices()[0].device_kind.lower()
    except Exception:
        pass
    if "7x" in kind or "v7" in kind:
        return dict(vmem_limit=48 * 2**20, lane_align=256, two_tc=True,
                    ln_acc_cap=6 * 2**20, w_tile_cap=16 * 2**20)
    if "v6" in kind:
        return dict(vmem_limit=100 * 2**20, lane_align=256, two_tc=False,
                    ln_acc_cap=12 * 2**20, w_tile_cap=24 * 2**20)
    if "v5" in kind:
        return dict(vmem_limit=100 * 2**20, lane_align=128, two_tc=False,
                    ln_acc_cap=12 * 2**20, w_tile_cap=24 * 2**20)
    # Unknown / older generations: conservative.
    return dict(vmem_limit=48 * 2**20, lane_align=128, two_tc=False,
                ln_acc_cap=6 * 2**20, w_tile_cap=16 * 2**20)


# ----------------------------------------------------------------------------
# Tiling helpers.
# ----------------------------------------------------------------------------
def _pick_tile(dim, pref, align):
    """Return (tile, padded_dim). Full-dim blocks are always legal; otherwise
    pick the largest aligned divisor <= pref, else pad to an aligned tile."""
    if dim <= pref:
        return dim, dim
    t = (pref // align) * align
    while t >= align:
        if dim % t == 0:
            return t, dim
        t -= align
    t = max(align, (pref // align) * align)
    padded = ((dim + t - 1) // t) * t
    return t, padded


def _pad2(a, rows, cols):
    r, c = a.shape
    if r == rows and c == cols:
        return a
    return jnp.pad(a, ((0, rows - r), (0, cols - c)))


# ----------------------------------------------------------------------------
# Parameter prep: bf16 weights (cast once, hoisted out of the forward path),
# f32 (1, N) bias / gamma / beta.
# ----------------------------------------------------------------------------
def prepare_params(params):
    if params.get("_prepared", False):
        return params
    return {
        "_prepared": True,
        "weights": [jnp.asarray(w, MXU_DTYPE) for w in params["weights"]],
        "biases": [jnp.asarray(b, jnp.float32).reshape(1, -1)
                   for b in params["biases"]],
        "ln_gamma": [jnp.asarray(g, jnp.float32).reshape(1, -1)
                     for g in params["ln_gamma"]],
        "ln_beta": [jnp.asarray(bt, jnp.float32).reshape(1, -1)
                    for bt in params["ln_beta"]],
    }


# ----------------------------------------------------------------------------
# Per-layer tiled linear kernel:
#   acc += x_tile @ w_tile (bf16 operands, f32 accumulation on MXU)
#   last-K epilogue: + bias, optional LayerNorm, optional ReLU,
#                    optional 0.5*y + 0.5*mean(y, axis=-1)
# ----------------------------------------------------------------------------
def _linear_kernel(*refs, use_ln, activation, combine_mean, ln_eps):
    if use_ln:
        x_ref, w_ref, b_ref, g_ref, bt_ref, o_ref, acc_ref = refs
    else:
        x_ref, w_ref, b_ref, o_ref, acc_ref = refs
    k = pl.program_id(2)

    @pl.when(k == 0)
    def _init():
        acc_ref[...] = jnp.zeros_like(acc_ref)

    acc_ref[...] += jnp.dot(x_ref[...], w_ref[...],
                            preferred_element_type=jnp.float32)

    @pl.when(k == pl.num_programs(2) - 1)
    def _epilogue():
        y = acc_ref[...] + b_ref[...]                      # [tm, tn] f32
        if use_ln:
            mu = jnp.mean(y, axis=-1, keepdims=True)
            var = jnp.mean((y - mu) ** 2, axis=-1, keepdims=True)
            y = (y - mu) * jax.lax.rsqrt(var + ln_eps)
            y = y * g_ref[...] + bt_ref[...]
        if activation == "relu":
            y = jnp.maximum(y, 0.0)
        if combine_mean:
            y = 0.5 * y + 0.5 * jnp.mean(y, axis=-1, keepdims=True)
        o_ref[...] = y.astype(o_ref.dtype)


def linear_fused(x, w, b, gamma=None, beta=None, *, activation=None,
                 use_ln=False, combine_mean=False, out_dtype=None, hw=None,
                 tm_pref=512, tn_pref=1024, tk_pref=2048, ln_eps=LN_EPS):
    """y = epilogue(x @ w + b); x: [M, K], w: [K, N] -> [M, N]."""
    hw = hw or _hw_config()
    M, K = x.shape
    Kw, N = w.shape
    assert K == Kw
    out_dtype = out_dtype if out_dtype is not None else x.dtype
    lane = hw["lane_align"]

    if use_ln or combine_mean:
        # Row-wise epilogue (LN / mean over features) needs the full N row.
        tn, Np = N, N
        acc_rows = max(16, (hw["ln_acc_cap"] // (4 * N)) // 16 * 16)
        tm_eff = min(tm_pref, acc_rows)
        if hw["two_tc"] and M >= 32:
            # N grid axis collapses to 1: keep >= 2 M-tiles so both cores work.
            tm_eff = min(tm_eff, max(16, ((M // 2) // 16) * 16))
        tm, Mp = _pick_tile(M, tm_eff, 16)
        tk_cap = (hw["w_tile_cap"] // (4 * N)) // lane * lane
        tk_eff = min(tk_pref, max(lane, tk_cap))
        tk, Kp = _pick_tile(K, tk_eff, lane)
    else:
        tm, Mp = _pick_tile(M, tm_pref, 16)
        tn, Np = _pick_tile(N, tn_pref, lane)
        tk, Kp = _pick_tile(K, tk_pref, lane)

    xm = _pad2(x.astype(MXU_DTYPE), Mp, Kp)          # no-op cast for bf16 acts
    wm = _pad2(w.astype(MXU_DTYPE), Kp, Np)          # no-op cast for prepped w
    b2 = _pad2(b.reshape(1, -1).astype(jnp.float32), 1, Np)

    operands = [xm, wm, b2]
    in_specs = [
        pl.BlockSpec((tm, tk), lambda i, j, k: (i, k)),   # x
        pl.BlockSpec((tk, tn), lambda i, j, k: (k, j)),   # w
        pl.BlockSpec((1, tn), lambda i, j, k: (0, j)),    # bias
    ]
    if use_ln:
        operands += [gamma.reshape(1, -1).astype(jnp.float32),
                     beta.reshape(1, -1).astype(jnp.float32)]
        in_specs += [pl.BlockSpec((1, tn), lambda i, j, k: (0, j)),
                     pl.BlockSpec((1, tn), lambda i, j, k: (0, j))]

    kernel = functools.partial(_linear_kernel, use_ln=use_ln,
                               activation=activation,
                               combine_mean=combine_mean, ln_eps=ln_eps)

    out = pl.pallas_call(
        kernel,
        out_shape=jax.ShapeDtypeStruct((Mp, Np), out_dtype),
        grid_spec=pltpu.PrefetchScalarGridSpec(
            num_scalar_prefetch=0,
            grid=(Mp // tm, Np // tn, Kp // tk),
            in_specs=in_specs,
            out_specs=pl.BlockSpec((tm, tn), lambda i, j, k: (i, j)),
            scratch_shapes=[pltpu.VMEM((tm, tn), jnp.float32)],
        ),
        compiler_params=pltpu.CompilerParams(
            dimension_semantics=("parallel", "parallel", "arbitrary"),
            vmem_limit_bytes=hw["vmem_limit"],
        ),
    )(*operands)

    if (Mp, Np) != (M, N):
        out = out[:M, :N]
    return out


# ----------------------------------------------------------------------------
# Whole-network fused kernel (small models): all weights resident in VMEM,
# layer loop inside the kernel, grid only over M tiles.
# ----------------------------------------------------------------------------
def _mlp_fused_kernel(*refs, layer_flags, ln_eps):
    x_ref, o_ref = refs[0], refs[-1]
    pos = 1
    h = x_ref[...].astype(jnp.float32)
    nl = len(layer_flags)
    for i, (use_ln, relu) in enumerate(layer_flags):
        w_ref, b_ref = refs[pos], refs[pos + 1]
        pos += 2
        if use_ln:
            g_ref, bt_ref = refs[pos], refs[pos + 1]
            pos += 2
        y = jnp.dot(h.astype(MXU_DTYPE), w_ref[...],
                    preferred_element_type=jnp.float32) + b_ref[...]
        if use_ln:
            mu = jnp.mean(y, axis=-1, keepdims=True)
            var = jnp.mean((y - mu) ** 2, axis=-1, keepdims=True)
            y = (y - mu) * jax.lax.rsqrt(var + ln_eps)
            y = y * g_ref[...] + bt_ref[...]
        if relu:
            y = jnp.maximum(y, 0.0)
        # Mirror the per-layer path's bf16 inter-layer storage (exact round-trip).
        h = y.astype(MXU_DTYPE).astype(jnp.float32) if i < nl - 1 else y
    out = 0.5 * h + 0.5 * jnp.mean(h, axis=-1, keepdims=True)
    o_ref[...] = out.astype(o_ref.dtype)


def _fits_fused(params, M, norm, budget=12 * 2**20):
    n = len(params["weights"])
    total, max_d = 0, 0
    for i in range(n):
        Kd, Nd = params["weights"][i].shape
        max_d = max(max_d, Kd, Nd)
        total += 2 * (Kd * Nd * 2)           # bf16 weights (assume dbl-buffered)
        total += 2 * (Nd * 4)                # bias
        if norm and i < n - 1:
            total += 4 * (Nd * 4)            # gamma/beta
    tm = min(M, 256)
    total += 2 * (tm * params["weights"][0].shape[0] * 2)    # x tile
    total += 2 * (tm * params["weights"][-1].shape[1] * 4)   # out tile
    total += 4 * (tm * max_d * 4)                            # activation slabs
    return total <= budget and max_d <= 4096


def mlp_fused_forward(x, params, *, relu_out=True, norm=False,
                      out_dtype=jnp.float32, hw=None, ln_eps=LN_EPS):
    hw = hw or _hw_config()
    params = prepare_params(params)
    M, K = x.shape
    n = len(params["weights"])
    n_out = params["weights"][-1].shape[1]

    layer_flags = tuple(
        (bool(norm and i < n - 1), bool(i < n - 1 or relu_out))
        for i in range(n))

    tm, Mp = _pick_tile(M, 256, 16)
    xm = _pad2(x.astype(MXU_DTYPE), Mp, K)

    operands = [xm]
    in_specs = [pl.BlockSpec((tm, K), lambda i: (i, 0))]
    for i in range(n):
        w, bvec = params["weights"][i], params["biases"][i]
        operands += [w, bvec]
        in_specs += [pl.BlockSpec(w.shape, lambda i: (0, 0)),
                     pl.BlockSpec(bvec.shape, lambda i: (0, 0))]
        if layer_flags[i][0]:
            g, bt = params["ln_gamma"][i], params["ln_beta"][i]
            operands += [g, bt]
            in_specs += [pl.BlockSpec(g.shape, lambda i: (0, 0)),
                         pl.BlockSpec(bt.shape, lambda i: (0, 0))]

    kernel = functools.partial(_mlp_fused_kernel, layer_flags=layer_flags,
                               ln_eps=ln_eps)
    out = pl.pallas_call(
        kernel,
        out_shape=jax.ShapeDtypeStruct((Mp, n_out), out_dtype),
        grid_spec=pltpu.PrefetchScalarGridSpec(
            num_scalar_prefetch=0,
            grid=(Mp // tm,),
            in_specs=in_specs,
            out_specs=pl.BlockSpec((tm, n_out), lambda i: (i, 0)),
        ),
        compiler_params=pltpu.CompilerParams(
            dimension_semantics=("parallel",),
            vmem_limit_bytes=hw["vmem_limit"],
        ),
    )(*operands)
    return out[:M] if Mp != M else out


# ----------------------------------------------------------------------------
# MLP forward — picks fused-network vs. per-layer tiled path.
# ----------------------------------------------------------------------------
def mlp_forward(x, params, *, relu_out=True, norm=False,
                out_dtype=jnp.float32, fuse_network=None):
    hw = _hw_config()
    params = prepare_params(params)
    if fuse_network is None:
        fuse_network = _fits_fused(params, x.shape[0], norm)
    if fuse_network:
        return mlp_fused_forward(x, params, relu_out=relu_out, norm=norm,
                                 out_dtype=out_dtype, hw=hw)
    n = len(params["weights"])
    h = x
    for i in range(n):
        is_last = i == n - 1
        use_ln = bool(norm and not is_last)
        h = linear_fused(
            h, params["weights"][i], params["biases"][i],
            gamma=params["ln_gamma"][i] if use_ln else None,
            beta=params["ln_beta"][i] if use_ln else None,
            activation="relu" if (not is_last or relu_out) else None,
            use_ln=use_ln,
            combine_mean=is_last,                       # fuse 0.5*x + 0.5*mean
            out_dtype=(out_dtype if is_last else MXU_DTYPE),
            hw=hw)
    return h


# ----------------------------------------------------------------------------
# Pure-JAX reference (mirrors bf16 MXU operands / f32 accumulate / bf16
# inter-layer storage).
# ----------------------------------------------------------------------------
def mlp_reference(x, params, *, relu_out=True, norm=False, ln_eps=LN_EPS):
    n = len(params["weights"])
    h = x.astype(jnp.float32)
    for i in range(n):
        is_last = i == n - 1
        w = jnp.asarray(params["weights"][i], jnp.float32)
        b = jnp.asarray(params["biases"][i], jnp.float32).reshape(-1)
        hm = h.astype(MXU_DTYPE).astype(jnp.float32)
        wm = w.astype(MXU_DTYPE).astype(jnp.float32)
        y = jnp.dot(hm, wm, precision=jax.lax.Precision.HIGHEST) + b
        if norm and not is_last:
            mu = jnp.mean(y, axis=-1, keepdims=True)
            var = jnp.mean((y - mu) ** 2, axis=-1, keepdims=True)
            y = (y - mu) * jax.lax.rsqrt(var + ln_eps)
            y = (y * jnp.asarray(params["ln_gamma"][i], jnp.float32).reshape(-1)
                 + jnp.asarray(params["ln_beta"][i], jnp.float32).reshape(-1))
        if (not is_last) or relu_out:
            y = jnp.maximum(y, 0.0)
        if not is_last:
            y = y.astype(MXU_DTYPE).astype(jnp.float32)   # stored in bf16
        h = y
    return 0.5 * h + 0.5 * jnp.mean(h, axis=1, keepdims=True)


# ----------------------------------------------------------------------------
# Deterministic synthetic parameters (PyTorch-like Linear init).
# ----------------------------------------------------------------------------
def init_mlp_params(key, inp_dim, out_dim, num_layers=1, layers=None, bias=True):
    layers = list(layers) if layers else []
    dims, incoming = [], inp_dim
    for _ in range(num_layers - 1):
        outgoing = layers.pop(0) if layers else incoming
        dims.append((incoming, outgoing))
        incoming = outgoing
    dims.append((incoming, out_dim))

    keys = jax.random.split(key, 2 * len(dims))
    weights, biases, gammas, betas = [], [], [], []
    for li, (din, dout) in enumerate(dims):
        bound = 1.0 / (din ** 0.5)
        w = jax.random.uniform(keys[2 * li], (din, dout), jnp.float32, -bound, bound)
        bv = (jax.random.uniform(keys[2 * li + 1], (dout,), jnp.float32, -bound, bound)
              if bias else jnp.zeros((dout,), jnp.float32))
        weights.append(w)
        biases.append(bv)
        gammas.append(jnp.ones((dout,), jnp.float32))
        betas.append(jnp.zeros((dout,), jnp.float32))
    return {"weights": weights, "biases": biases,
            "ln_gamma": gammas, "ln_beta": betas}


def _check(out, ref, shape, tag):
    assert out.shape == shape, (tag, out.shape, shape)
    assert bool(jnp.all(jnp.isfinite(out))), tag
    err = float(jnp.max(jnp.abs(out - ref)))
    assert bool(jnp.allclose(out, ref, atol=2e-2, rtol=2e-2)), (tag, err)


if __name__ == "__main__":
    key = jax.random.PRNGKey(0)
    k_param, k_x, k_p2, k_p3, k_x3 = jax.random.split(key, 5)

    # 1) Default MLP config (relu=True, bias=True, norm=False, dropout=False),
    #    small shapes -> whole-network fused kernel path.
    B, INP, OUT, NUM_LAYERS = 8, 32, 32, 3
    params = init_mlp_params(k_param, INP, OUT, num_layers=NUM_LAYERS)
    prepped = prepare_params(params)          # bf16 weight cast hoisted
    x = jax.random.normal(k_x, (B, INP), jnp.float32)

    out = jax.block_until_ready(mlp_forward(x, prepped, relu_out=True, norm=False))
    _check(out, mlp_reference(x, params, relu_out=True, norm=False), (B, OUT), "fused")

    # 2) norm=True, fused path (LayerNorm inside the single kernel).
    params_n = init_mlp_params(k_p2, INP, 16, num_layers=2)
    out_n = jax.block_until_ready(mlp_forward(x, params_n, relu_out=True, norm=True))
    _check(out_n, mlp_reference(x, params_n, relu_out=True, norm=True), (B, 16), "fused_norm")

    # 3) Per-layer tiled path with LayerNorm fused into the matmul epilogue.
    B3, INP3, OUT3 = 128, 256, 128
    params3 = init_mlp_params(k_p3, INP3, OUT3, num_layers=2)
    x3 = jax.random.normal(k_x3, (B3, INP3), jnp.float32)
    out3 = jax.block_until_ready(
        mlp_forward(x3, params3, relu_out=True, norm=True, fuse_network=False))
    _check(out3, mlp_reference(x3, params3, relu_out=True, norm=True), (B3, OUT3), "tiled_norm")

    # 4) Per-layer tiled path, no LayerNorm (general N-tiled branch).
    out4 = jax.block_until_ready(
        mlp_forward(x3, params3, relu_out=True, norm=False, fuse_network=False))
    _check(out4, mlp_reference(x3, params3, relu_out=True, norm=False), (B3, OUT3), "tiled")

    print("KERNEL_OK")
</pallas_src>

<mosaic_0001>
module attributes {stable_mosaic.version = 11 : i64} {
  func.func @_mlp_fused_kernel(%arg0: i32, %arg1: memref<8x32xbf16, #tpu.memory_space<vmem>>, %arg2: memref<32x32xbf16, #tpu.memory_space<vmem>>, %arg3: memref<1x32xf32, #tpu.memory_space<vmem>>, %arg4: memref<32x32xbf16, #tpu.memory_space<vmem>>, %arg5: memref<1x32xf32, #tpu.memory_space<vmem>>, %arg6: memref<32x32xbf16, #tpu.memory_space<vmem>>, %arg7: memref<1x32xf32, #tpu.memory_space<vmem>>, %arg8: memref<8x32xf32, #tpu.memory_space<vmem>>) attributes {dimension_semantics = [#tpu.dimension_semantics<parallel>], iteration_bounds = array<i64: 1>, scalar_prefetch = 0 : i64, scratch_operands = 0 : i64, tpu.core_type = #tpu.core_type<tc>, window_params = [{transform_indices = @transform_0, window_bounds = array<i64: 8, 32>}, {pipeline_mode = #tpu.pipeline_mode<synchronous>, transform_indices = @transform_1, window_bounds = array<i64: 32, 32>}, {pipeline_mode = #tpu.pipeline_mode<synchronous>, transform_indices = @transform_2, window_bounds = array<i64: 1, 32>}, {pipeline_mode = #tpu.pipeline_mode<synchronous>, transform_indices = @transform_3, window_bounds = array<i64: 32, 32>}, {pipeline_mode = #tpu.pipeline_mode<synchronous>, transform_indices = @transform_4, window_bounds = array<i64: 1, 32>}, {pipeline_mode = #tpu.pipeline_mode<synchronous>, transform_indices = @transform_5, window_bounds = array<i64: 32, 32>}, {pipeline_mode = #tpu.pipeline_mode<synchronous>, transform_indices = @transform_6, window_bounds = array<i64: 1, 32>}, {transform_indices = @transform_7, window_bounds = array<i64: 8, 32>}]} {
    %c0 = arith.constant 0 : index
    %c0_0 = arith.constant 0 : index
    %0 = vector.load %arg1[%c0, %c0_0] : memref<8x32xbf16, #tpu.memory_space<vmem>>, vector<8x32xbf16>
    %1 = arith.extf %0 : vector<8x32xbf16> to vector<8x32xf32>
    %2 = arith.truncf %1 : vector<8x32xf32> to vector<8x32xbf16>
    %c0_1 = arith.constant 0 : index
    %c0_2 = arith.constant 0 : index
    %3 = vector.load %arg2[%c0_1, %c0_2] : memref<32x32xbf16, #tpu.memory_space<vmem>>, vector<32x32xbf16>
    %cst = arith.constant dense<0.000000e+00> : vector<8x32xf32>
    %4 = tpu.matmul %2, %3, %cst {dimension_numbers = #tpu.dot_dimension_numbers<[1], [0], [0], [1], [0, 0, 1, 1], [], []>} : vector<8x32xbf16>, vector<32x32xbf16>, vector<8x32xf32> -> vector<8x32xf32>
    %c0_3 = arith.constant 0 : index
    %c0_4 = arith.constant 0 : index
    %5 = vector.load %arg3[%c0_3, %c0_4] : memref<1x32xf32, #tpu.memory_space<vmem>>, vector<1x32xf32>
    %6 = vector.broadcast %5 : vector<1x32xf32> to vector<8x32xf32>
    %7 = arith.addf %4, %6 : vector<8x32xf32>
    %cst_5 = arith.constant 0.000000e+00 : f32
    %8 = vector.broadcast %cst_5 : f32 to vector<8x32xf32>
    %9 = arith.maximumf %7, %8 : vector<8x32xf32>
    %10 = arith.truncf %9 : vector<8x32xf32> to vector<8x32xbf16>
    %11 = arith.extf %10 : vector<8x32xbf16> to vector<8x32xf32>
    %12 = arith.truncf %11 : vector<8x32xf32> to vector<8x32xbf16>
    %c0_6 = arith.constant 0 : index
    %c0_7 = arith.constant 0 : index
    %13 = vector.load %arg4[%c0_6, %c0_7] : memref<32x32xbf16, #tpu.memory_space<vmem>>, vector<32x32xbf16>
    %cst_8 = arith.constant dense<0.000000e+00> : vector<8x32xf32>
    %14 = tpu.matmul %12, %13, %cst_8 {dimension_numbers = #tpu.dot_dimension_numbers<[1], [0], [0], [1], [0, 0, 1, 1], [], []>} : vector<8x32xbf16>, vector<32x32xbf16>, vector<8x32xf32> -> vector<8x32xf32>
    %c0_9 = arith.constant 0 : index
    %c0_10 = arith.constant 0 : index
    %15 = vector.load %arg5[%c0_9, %c0_10] : memref<1x32xf32, #tpu.memory_space<vmem>>, vector<1x32xf32>
    %16 = vector.broadcast %15 : vector<1x32xf32> to vector<8x32xf32>
    %17 = arith.addf %14, %16 : vector<8x32xf32>
    %cst_11 = arith.constant 0.000000e+00 : f32
    %18 = vector.broadcast %cst_11 : f32 to vector<8x32xf32>
    %19 = arith.maximumf %17, %18 : vector<8x32xf32>
    %20 = arith.truncf %19 : vector<8x32xf32> to vector<8x32xbf16>
    %21 = arith.extf %20 : vector<8x32xbf16> to vector<8x32xf32>
    %22 = arith.truncf %21 : vector<8x32xf32> to vector<8x32xbf16>
    %c0_12 = arith.constant 0 : index
    %c0_13 = arith.constant 0 : index
    %23 = vector.load %arg6[%c0_12, %c0_13] : memref<32x32xbf16, #tpu.memory_space<vmem>>, vector<32x32xbf16>
    %cst_14 = arith.constant dense<0.000000e+00> : vector<8x32xf32>
    %24 = tpu.matmul %22, %23, %cst_14 {dimension_numbers = #tpu.dot_dimension_numbers<[1], [0], [0], [1], [0, 0, 1, 1], [], []>} : vector<8x32xbf16>, vector<32x32xbf16>, vector<8x32xf32> -> vector<8x32xf32>
    %c0_15 = arith.constant 0 : index
    %c0_16 = arith.constant 0 : index
    %25 = vector.load %arg7[%c0_15, %c0_16] : memref<1x32xf32, #tpu.memory_space<vmem>>, vector<1x32xf32>
    %26 = vector.broadcast %25 : vector<1x32xf32> to vector<8x32xf32>
    %27 = arith.addf %24, %26 : vector<8x32xf32>
    %cst_17 = arith.constant 0.000000e+00 : f32
    %28 = vector.broadcast %cst_17 : f32 to vector<8x32xf32>
    %29 = arith.maximumf %27, %28 : vector<8x32xf32>
    %cst_18 = arith.constant 5.000000e-01 : f32
    %30 = vector.broadcast %cst_18 : f32 to vector<8x32xf32>
    %31 = arith.mulf %30, %29 : vector<8x32xf32>
    %cst_19 = arith.constant dense<0.000000e+00> : vector<8xf32>
    %32 = vector.multi_reduction <add>, %29, %cst_19 [1] : vector<8x32xf32> to vector<8xf32>
    %33 = vector.shape_cast %32 : vector<8xf32> to vector<8x1xf32>
    %cst_20 = arith.constant 3.200000e+01 : f32
    %34 = vector.broadcast %cst_20 : f32 to vector<8x1xf32>
    %35 = arith.divf %33, %34 : vector<8x1xf32>
    %cst_21 = arith.constant 5.000000e-01 : f32
    %36 = vector.broadcast %cst_21 : f32 to vector<8x1xf32>
    %37 = arith.mulf %36, %35 : vector<8x1xf32>
    %38 = vector.broadcast %37 : vector<8x1xf32> to vector<8x32xf32>
    %39 = arith.addf %31, %38 : vector<8x32xf32>
    %c0_22 = arith.constant 0 : index
    %c0_23 = arith.constant 0 : index
    %40 = vector.load %arg8[%c0_22, %c0_23] : memref<8x32xf32, #tpu.memory_space<vmem>>, vector<8x32xf32>
    tpu.vector_store %arg8[%c0_22, %c0_23], %39 {strides = array<i32>} : memref<8x32xf32, #tpu.memory_space<vmem>>, vector<8x32xf32>,
    return
  }
  func.func @transform_0(%arg0: i32) -> (i32, i32) {
    %c0_i32 = arith.constant 0 : i32
    %c0_i32_0 = arith.constant 0 : i32
    return %arg0, %c0_i32 : i32, i32
  }
  func.func @transform_1(%arg0: i32) -> (i32, i32) {
    %c0_i32 = arith.constant 0 : i32
    %c0_i32_0 = arith.constant 0 : i32
    %c0_i32_1 = arith.constant 0 : i32
    return %c0_i32, %c0_i32_0 : i32, i32
  }
  func.func @transform_2(%arg0: i32) -> (i32, i32) {
    %c0_i32 = arith.constant 0 : i32
    %c0_i32_0 = arith.constant 0 : i32
    %c0_i32_1 = arith.constant 0 : i32
    return %c0_i32, %c0_i32_0 : i32, i32
  }
  func.func @transform_3(%arg0: i32) -> (i32, i32) {
    %c0_i32 = arith.constant 0 : i32
    %c0_i32_0 = arith.constant 0 : i32
    %c0_i32_1 = arith.constant 0 : i32
    return %c0_i32, %c0_i32_0 : i32, i32
  }
  func.func @transform_4(%arg0: i32) -> (i32, i32) {
    %c0_i32 = arith.constant 0 : i32
    %c0_i32_0 = arith.constant 0 : i32
    %c0_i32_1 = arith.constant 0 : i32
    return %c0_i32, %c0_i32_0 : i32, i32
  }
  func.func @transform_5(%arg0: i32) -> (i32, i32) {
    %c0_i32 = arith.constant 0 : i32
    %c0_i32_0 = arith.constant 0 : i32
    %c0_i32_1 = arith.constant 0 : i32
    return %c0_i32, %c0_i32_0 : i32, i32
  }
  func.func @transform_6(%arg0: i32) -> (i32, i32) {
    %c0_i32 = arith.constant 0 : i32
    %c0_i32_0 = arith.constant 0 : i32
    %c0_i32_1 = arith.constant 0 : i32
    return %c0_i32, %c0_i32_0 : i32, i32
  }
  func.func @transform_7(%arg0: i32) -> (i32, i32) {
    %c0_i32 = arith.constant 0 : i32
    %c0_i32_0 = arith.constant 0 : i32
    return %arg0, %c0_i32 : i32, i32
  }
}

</mosaic_0001>

<bundles_post_ra>
// kernel: tpu_custom_call.1
= control target key start
LH: loop header
LB: loop body
LE: loop exit
PB: predicated region body
PF: predicated region fallthrough
CT: control target
= control target key end

     0   :  { %12 = vsyncpa [#allocation3], 0  ;;  %s489_s0 = inlined_call_operand.hbm [shape: bf16[8,32], index: 0, kind: input, shape index: {}]   ;;  %s490_s1 = inlined_call_operand.hbm [shape: bf16[32,32], index: 1, kind: input, shape index: {}]   ;;  %s491_s2 = inlined_call_operand.vmem [shape: f32[1,32], index: 2, kind: input, shape index: {}]   ;;  %s492_s3 = inlined_call_operand.hbm [shape: bf16[32,32], index: 3, kind: input, shape index: {}]   ;;  %s493_s4 = inlined_call_operand.vmem [shape: f32[1,32], index: 4, kind: input, shape index: {}]   ;;  %s494_s5 = inlined_call_operand.hbm [shape: bf16[32,32], index: 5, kind: input, shape index: {}]   ;;  %s495_s6 = inlined_call_operand.vmem [shape: f32[1,32], index: 6, kind: input, shape index: {}]   ;;  %s496_s7 = inlined_call_operand.hbm [shape: f32[8,32], index: 7, kind: output, shape index: {}]  }
   0x1   :  { %13 = vsyncpa [#allocation6], 0 }
   0x2   :  { %14 = vsyncpa [#allocation9], 0  ;;  %s31_s26 = sshll.u32 %s490_s1, 4  ;;  %s32_s26 = int_to_ptr.hbm [resolvable:$true] %s31_s26 }
   0x3   :  { %15 = vsyncpa [#allocation4], 0  ;;  %s412_s27 = smov [#allocation5]   ;;  %s21_s8 = sshll.u32 %s489_s0, 4  ;;  %s22_s8 = int_to_ptr.hbm [resolvable:$true] %s21_s8 }
   0x4   :  { %s33_s28 = sshll.u32 %s412_s27, 4  ;;  %s413_s9 = smov 64   ;;  %s34_s28 = int_to_ptr.vmem [resolvable:$true] %s33_s28 }
   0x5   :  { %s414_s10 = smov 4   ;;  %s415_s11 = smov [#allocation2]  }
   0x6   :  { %39 = dma.hbm_to_vmem [thread:$0]  %s32_s26, 256, %s34_s28, [#allocation6], %s413_s9, %s413_s9, %s414_s10  }
   0x7   :  { %s23_s12 = sshll.u32 %s415_s11, 4  ;;  %s46_s15 = sshll.u32 %s492_s3, 4  ;;  %s24_s12 = int_to_ptr.vmem [resolvable:$true] %s23_s12  ;;  %s47_s15 = int_to_ptr.hbm [resolvable:$true] %s46_s15 }
   0x8   :  { %26 = dma.hbm_to_vmem [thread:$0]  %s22_s8, 64, %s24_s12, [#allocation3]  }
   0x9   :  { %s61_s17 = sshll.u32 %s494_s5, 4  ;;  %s416_s18 = smov [#allocation7]   ;;  %s62_s17 = int_to_ptr.hbm [resolvable:$true] %s61_s17 }
   0xa   :  { %s48_s19 = sshll.u32 %s416_s18, 4  ;;  %s417_s0 = smov [#allocation8]   ;;  %s49_s19 = int_to_ptr.vmem [resolvable:$true] %s48_s19 }
   0xb   :  { %54 = dma.hbm_to_vmem [thread:$0]  %s47_s15, 256, %s49_s19, [#allocation6], %s413_s9, %s413_s9, %s414_s10  }
   0xc   :  { %s63_s20 = sshll.u32 %s417_s0, 4  ;;  %s64_s20 = int_to_ptr.vmem [resolvable:$true] %s63_s20 }
   0xd   :  { %69 = dma.hbm_to_vmem [thread:$0]  %s62_s17, 256, %s64_s20, [#allocation9], %s413_s9, %s413_s9, %s414_s10  }
   0xe   :  { %404 = dma.done.wait [#allocation3], 64  }
   0xf   :  { %405 = vsyncadd [#allocation3], 4294967232 }
  0x10   :  { %406 = dma.done.wait [#allocation6], 512  }
  0x11   :  { %407 = vsyncadd [#allocation6], 4294966784 }
  0x12   :  { %408 = dma.done.wait [#allocation9], 256  }
  0x13   :  { %409 = vsyncadd [#allocation9], 4294967040  ;;  %v266_v0 = vld [vmem:[#allocation5 + $0x8] sm:$0xff]  ;;  %v265_v1 = vld [vmem:[#allocation5] sm:$0xff]  ;;  %vm110_vm0 = vcmask 261120   ;;  %v418_v25 = vmov 32.0  }
  0x14   :  { %120 = vmatpush.bf16.msra.mxu0 %v266_v0  ;;  %v89_v2 = vld [vmem:[#allocation2] sm:$0xf]  ;;  %v267_v4 = vld [vmem:[#allocation7] sm:$0xff]  ;;  %v270_v11 = vld [vmem:[#allocation8 + $0x8] sm:$0xff]  ;;  %282 = vrcp.f32 %v418_v25  ;;  %s226_s26 = sshll.u32 %s496_s7, 4  ;;  %s227_s26 = int_to_ptr.hbm [resolvable:$true] %s226_s26 }
  0x15   :  { %v268_v3 = vld [vmem:[#allocation7 + $0x8] sm:$0xff]  ;;  %196 = vmatpush.bf16.msra.mxu2 %v270_v11  ;;  %v269_v12 = vld [vmem:[#allocation8] sm:$0xff] }
  0x16   :  { %158 = vmatpush.bf16.msra.mxu1 %v268_v3  ;;  %v279_v5 = vld [vmem:[%s491_s2] ss:$0 sm:$0xff] }
  0x17   :  { %v280_v13 = vld [vmem:[%s493_s4] ss:$0 sm:$0xff]  ;;  %s419_s4 = smov [#allocation10]  }
  0x18   :  { %121 = vmatpush.bf16.msra.mxu0 %v265_v1  ;;  %v281_v19 = vld [vmem:[%s495_s6] ss:$0 sm:$0xff]  ;;  %s224_s6 = sshll.u32 %s419_s4, 4  ;;  %s225_s6 = int_to_ptr.vmem [resolvable:$true] %s224_s6 }
  0x19   :  { %197 = vmatpush.bf16.msra.mxu2 %v269_v12 }
  0x1a   :  { %159 = vmatpush.bf16.msra.mxu1 %v267_v4  ;;  %v283_v26 = vpop.eup %282 }
  0x1b   :  { %246 = vmatmul.msk.bf16.vlgmr.msra.gmra.mxu0 %vm110_vm0, %v89_v2  ;;  %v209_v27 = vmul.f32 32.0, %v283_v26  ;;  %vm213_vm1 = vweird.f32 %v283_v26 }
  0x1d   :  { %v210_v28 = vsub.f32 1.0, %v209_v27 }
  0x1f   :  { %v211_v29 = vmul.f32 %v283_v26, %v210_v28 }
  0x21   :  { %v212_v30 = vadd.f32 %v283_v26, %v211_v29 }
  0x23   :  { %v214_v31 = vsel %vm213_vm1, %v283_v26, %v212_v30 }
  0x98   :  { %v123_v6 = vpop.f32.mrf.mxu0 }
  0x99   :  { %v124_v7 = vadd.f32 %v279_v5, %v123_v6 }
  0x9b   :  { %v127_v8 = vmax.f32 %v124_v7, 0.0 }
  0x9d   :  { %v128_v9 = vpack.c.bf16 %v127_v8, %v127_v8 }
  0x9f   :  { %255 = vmatmul.msk.bf16.vlgmr.msra.gmra.mxu1 %vm110_vm0, %v128_v9 }
  0xa0   :  { %v125_v10 = vpop.f32.mrf.mxu0 }
 0x11c   :  { %v161_v14 = vpop.f32.mrf.mxu1 }
 0x11d   :  { %v162_v15 = vadd.f32 %v280_v13, %v161_v14 }
 0x11f   :  { %v165_v16 = vmax.f32 %v162_v15, 0.0 }
 0x121   :  { %v166_v17 = vpack.c.bf16 %v165_v16, %v165_v16 }
 0x123   :  { %264 = vmatmul.msk.bf16.vlgmr.msra.gmra.mxu2 %vm110_vm0, %v166_v17 }
 0x124   :  { %v163_v18 = vpop.f32.mrf.mxu1 }
 0x1a6   :  { %v199_v20 = vpop.f32.mrf.mxu2 }
 0x1a7   :  { %v200_v21 = vadd.f32 %v281_v19, %v199_v20 }
 0x1a9   :  { %v203_v22 = vmax.f32 %v200_v21, 0.0 }
 0x1ab   :  { %v205_v23 = vsel %vm110_vm0, %v203_v22, 0.0  ;;  %v204_v34 = vmul.f32 0.5, %v203_v22 }
 0x1ac   :  { %206 = vadd.xlane.f32.xlu0 %v205_v23 }
 0x1ae   :  { %v201_v24 = vpop.f32.mrf.mxu2 }
 0x21f   :  { %v207_v32 = vpop.xlane.xlu0 %206 }
 0x220   :  { %v215_v33 = vmul.f32 %v214_v31, %v207_v32 }
 0x222   :  { %v216_v35 = vmul.f32 0.5, %v215_v33 }
 0x224   :  { %v217_v36 = vadd.f32 %v216_v35, %v204_v34 }
 0x226   :  { %218 = vst.msk [vmem:[#allocation10] sm:$0xff] %vm110_vm0, %v217_v36 }
 0x227   :  { %229 = dma.vmem_to_hbm [thread:$0]  %s225_s6, 128, %s227_s26, [#allocation4]  }
 0x228   :  { %410 = dma.done.wait [#allocation4], 128  }
 0x229   :  { %411 = vsyncadd [#allocation4], 4294967168 }
 0x22a   :  { %234 = vsyncpa [#allocation3], 1 }
 0x22b   :  { %235 = vsyncpa [#allocation6], 1 }
 0x22c   :  { %236 = vsyncpa [#allocation9], 1 }
 0x22d   :  { %237 = vsyncpa [#allocation4], 1 }

</bundles_post_ra>
